<compile_context>
chip_gen: v6e
topology: v6e:2x2x1
jax: 0.10.0
libtpu: 0.0.40
codegen_flags: <defaults>
</compile_context>

<pallas_src>
import functools

import jax
import jax.numpy as jnp
from jax import lax
from jax.experimental import pallas as pl
from jax.experimental.pallas import tpu as pltpu


# --------------------------------------------------------------------------- #
# Kernel 1: fused per-head fc + attention logits                              #
# --------------------------------------------------------------------------- #
def _proj_kernel(x_ref, w_ref, acat_ref, h_ref, s_ref, *, matmul_dtype):
    x = x_ref[...].astype(matmul_dtype)                       # (tp, D_in)
    w = w_ref[...].astype(matmul_dtype)                       # (D_in, HD)
    h = jnp.dot(x, w, preferred_element_type=jnp.float32)     # (tp, HD)
    # Per-head logits [s_src | s_dst] via one block-diagonal matmul.
    s = jnp.dot(h.astype(matmul_dtype), acat_ref[...].astype(matmul_dtype),
                preferred_element_type=jnp.float32)           # (tp, 2H)
    h_ref[...] = h.astype(h_ref.dtype)
    s_ref[...] = s.astype(s_ref.dtype)


# --------------------------------------------------------------------------- #
# Kernel 2: flash-style masked attention + aggregation                        #
# --------------------------------------------------------------------------- #
def _attn_kernel(s_src_ref, s_dst_ref, adj_ref, h_ref, nnorm_ref, *rest,
                 alpha, n_heads, d_out, graph_norm, has_residual, use_sel,
                 matmul_dtype):
    idx = 0
    sel_ref = None
    if use_sel:
        sel_ref = rest[idx]; idx += 1
    res_ref = None
    if has_residual:
        res_ref = rest[idx]; idx += 1
    o_ref = rest[idx]
    acc_ref = rest[idx + 1]        # (tr, HD) f32 scratch
    rowsum_ref = rest[idx + 2]     # (tr, H)  f32 scratch

    c = pl.program_id(1)

    @pl.when(c == 0)
    def _init():
        acc_ref[...] = jnp.zeros_like(acc_ref)
        rowsum_ref[...] = jnp.zeros_like(rowsum_ref)

    # Edge mask computed ONCE per (row, col) block and reused by every head.
    mask = adj_ref[...].astype(jnp.float32) > 0.0             # (tr, tc)
    s_src = s_src_ref[...]                                    # (tr, H)  f32
    s_dst_t = s_dst_ref[...]                                  # (H, tc)  f32
    h_col = h_ref[...].astype(matmul_dtype)                   # (tc, HD)
    if use_sel:
        sel = sel_ref[...].astype(matmul_dtype)               # (H, HD)

    head_ids = lax.broadcasted_iota(jnp.int32, (1, n_heads), 1)   # (1, H)
    rowsum_upd = jnp.zeros(rowsum_ref.shape, jnp.float32)
    acc_upd = jnp.zeros(acc_ref.shape, jnp.float32) if use_sel else None

    # H is small -> static unroll.  TODO(synk): switch to lax.fori_loop(unroll=True)
    # if bundle dumps ever show vreg spills for large tile_c * n_heads.
    for hd in range(n_heads):
        scores = s_src[:, hd:hd + 1] + s_dst_t[hd:hd + 1, :]  # (tr, tc)
        leaky = jnp.where(scores > 0.0, scores, alpha * scores)
        # where-guard: non-edges never multiply exp by 0 (no 0*inf NaN).
        e = jnp.where(mask, jnp.exp(-leaky), 0.0)             # (tr, tc) f32
        rs = jnp.sum(e, axis=1, keepdims=True)                # (tr, 1)
        onehot = (head_ids == hd).astype(jnp.float32)         # (1, H)
        rowsum_upd = rowsum_upd + rs * onehot                 # (tr, H)
        e_c = e.astype(matmul_dtype)
        if use_sel:
            # Tiny D_out (< 128): selector-masked full-width aggregation.
            acc_upd = acc_upd + jnp.dot(e_c, h_col * sel[hd:hd + 1, :],
                                        preferred_element_type=jnp.float32)
        else:
            # Lane-dense path (D_out % 128 == 0): static 128-aligned slabs.
            lo = hd * d_out
            acc_ref[:, lo:lo + d_out] += jnp.dot(
                e_c, h_col[:, lo:lo + d_out],
                preferred_element_type=jnp.float32)

    rowsum_ref[...] += rowsum_upd
    if use_sel:
        acc_ref[...] += acc_upd

    @pl.when(c == pl.num_programs(1) - 1)
    def _finalize():
        # Normalisation runs once per row tile on a (tr, H) array, so the exact
        # reciprocal costs nothing measurable (flip approx=True for EUP offload).
        inv = pl.reciprocal(rowsum_ref[...], approx=False)    # (tr, H)
        acc = acc_ref[...]
        if use_sel:
            out = acc * jnp.dot(inv, sel.astype(jnp.float32),
                                preferred_element_type=jnp.float32)
        else:
            parts = []
            for hd in range(n_heads):
                lo = hd * d_out
                parts.append(acc[:, lo:lo + d_out] * inv[:, hd:hd + 1])
            out = jnp.concatenate(parts, axis=1)
        if graph_norm:
            out = out * nnorm_ref[...]                        # (tr, 1) broadcast
        # ELU (exp(x)-1 on the negative branch; matches F.elu within f32 noise).
        out = jnp.where(out > 0.0, out, jnp.exp(out) - 1.0)
        if has_residual:
            out = out + res_ref[...].astype(jnp.float32)      # fused residual
        o_ref[...] = out.astype(o_ref.dtype)


# --------------------------------------------------------------------------- #
# Wrapper                                                                     #
# --------------------------------------------------------------------------- #
def gat_layer(x, adj, n_norm, W, a, *, alpha, graph_norm=True, residue=False,
              tile_r=256, tile_c=256, tile_p=256, matmul_dtype=jnp.float32):
    """Pallas GATLayer forward.  Returns (N, n_heads*D_out), heads concatenated.

    adj is a dense 0/1 edge mask (any dtype; stored/streamed as int8).
    """
    N, D_in = x.shape
    H, _, D_out = W.shape
    HD = H * D_out

    # ---- static tiling (flash-style) --------------------------------------
    tile_r = min(tile_r, N)
    tile_c = min(tile_c, N)
    tile_p = min(tile_p, N)
    assert N % tile_r == 0 and N % tile_c == 0 and N % tile_p == 0, \
        "N must be divisible by the chosen tile sizes"
    assert (tile_r % 8 == 0) or tile_r == N
    assert (tile_c % 128 == 0) or tile_c == N
    assert (tile_p % 8 == 0) or tile_p == N

    if adj.dtype != jnp.int8:
        adj = (adj != 0).astype(jnp.int8)      # 4x less HBM traffic than f32
    x = x.astype(jnp.float32)
    n_norm = n_norm.astype(jnp.float32)

    # ---- pack per-head parameters (tiny, head-major lane concatenation) ---
    w_all = jnp.transpose(W, (1, 0, 2)).reshape(D_in, HD).astype(jnp.float32)
    sel = jnp.repeat(jnp.eye(H, dtype=jnp.float32), D_out, axis=1)   # (H, HD)
    a_src = jnp.reshape(a[:, 0, :], (HD, 1)).astype(jnp.float32)
    a_dst = jnp.reshape(a[:, 1, :], (HD, 1)).astype(jnp.float32)
    a_cat = jnp.concatenate([a_src * sel.T, a_dst * sel.T], axis=1)  # (HD, 2H)

    vmem_limit = 32 * 1024 * 1024   # raise for larger tiles (v5e default is 16 MiB)

    # ---- kernel 1: h = fc(x) for all heads + per-head logits --------------
    proj = functools.partial(_proj_kernel, matmul_dtype=matmul_dtype)
    h_all, s_all = pl.pallas_call(
        proj,
        out_shape=(jax.ShapeDtypeStruct((N, HD), matmul_dtype),
                   jax.ShapeDtypeStruct((N, 2 * H), jnp.float32)),
        grid=(N // tile_p,),
        in_specs=[pl.BlockSpec((tile_p, D_in), lambda i: (i, 0)),
                  pl.BlockSpec((D_in, HD), lambda i: (0, 0)),
                  pl.BlockSpec((HD, 2 * H), lambda i: (0, 0))],
        out_specs=(pl.BlockSpec((tile_p, HD), lambda i: (i, 0)),
                   pl.BlockSpec((tile_p, 2 * H), lambda i: (i, 0))),
        compiler_params=pltpu.CompilerParams(
            dimension_semantics=("parallel",),
            vmem_limit_bytes=vmem_limit),
    )(x, w_all, a_cat)

    s_src = s_all[:, :H]                    # (N, H)
    # Pre-transpose the tiny destination logits so kernel 2 only slices sublanes.
    s_dst_t = jnp.transpose(s_all[:, H:])   # (H, N)

    # ---- kernel 2: masked attention + aggregation (flash-style tiling) ----
    use_sel = (D_out % 128 != 0)            # selector form only for tiny heads
    has_residual = bool(residue) and (D_in == HD)
    grid = (N // tile_r, N // tile_c)

    in_specs = [
        pl.BlockSpec((tile_r, H), lambda r, c: (r, 0)),        # s_src
        pl.BlockSpec((H, tile_c), lambda r, c: (0, c)),        # s_dst^T
        pl.BlockSpec((tile_r, tile_c), lambda r, c: (r, c)),   # adj (int8)
        pl.BlockSpec((tile_c, HD), lambda r, c: (c, 0)),       # h column slab
        pl.BlockSpec((tile_r, 1), lambda r, c: (r, 0)),        # n_norm
    ]
    operands = [s_src, s_dst_t, adj, h_all, n_norm]
    if use_sel:
        in_specs.append(pl.BlockSpec((H, HD), lambda r, c: (0, 0)))
        operands.append(sel)
    if has_residual:
        in_specs.append(pl.BlockSpec((tile_r, HD), lambda r, c: (r, 0)))
        operands.append(x)

    attn = functools.partial(
        _attn_kernel, alpha=float(alpha), n_heads=H, d_out=D_out,
        graph_norm=bool(graph_norm), has_residual=has_residual,
        use_sel=use_sel, matmul_dtype=matmul_dtype)

    out = pl.pallas_call(
        attn,
        out_shape=jax.ShapeDtypeStruct((N, HD), jnp.float32),
        grid=grid,
        in_specs=in_specs,
        out_specs=pl.BlockSpec((tile_r, HD), lambda r, c: (r, 0)),
        scratch_shapes=[pltpu.VMEM((tile_r, HD), jnp.float32),
                        pltpu.VMEM((tile_r, H), jnp.float32)],
        compiler_params=pltpu.CompilerParams(
            dimension_semantics=("parallel", "arbitrary"),
            vmem_limit_bytes=vmem_limit),
    )(*operands)
    return out


# --------------------------------------------------------------------------- #
# Pure-JAX reference (dense formulation of the torch module)                  #
# --------------------------------------------------------------------------- #
def gat_layer_ref(x, adj, n_norm, W, a, *, alpha, graph_norm=True, residue=False):
    H = W.shape[0]
    adj = adj.astype(jnp.float32)
    outs = []
    for hd in range(H):
        h = x @ W[hd]
        s_src = h @ a[hd, 0]
        s_dst = h @ a[hd, 1]
        scores = s_src[:, None] + s_dst[None, :]
        leaky = jnp.where(scores > 0, scores, alpha * scores)
        e = jnp.where(adj > 0, jnp.exp(-leaky), 0.0)
        rowsum = jnp.sum(e, axis=1, keepdims=True)
        hp = (e @ h) / rowsum
        if graph_norm:
            hp = hp * n_norm
        hp = jnp.where(hp > 0, hp, jnp.expm1(hp))
        outs.append(hp)
    out = jnp.concatenate(outs, axis=1)
    if residue and x.shape[1] == out.shape[1]:
        out = out + x
    return out


# --------------------------------------------------------------------------- #
# Test driver                                                                 #
# --------------------------------------------------------------------------- #
def _run_case(name, *, N, D_in, D_out, H, tile_r, tile_c, tile_p, seed):
    key = jax.random.PRNGKey(seed)
    k1, k2, k3, k4, k5 = jax.random.split(key, 5)

    x = jax.random.normal(k1, (N, D_in), dtype=jnp.float32)

    # Random sparse graph + self loops (every row has >= 1 edge -> rowsum > 0,
    # matching the torch asserts).
    probs = jax.random.uniform(k2, (N, N))
    adj_f = (probs < 0.1).astype(jnp.float32)
    adj_f = jnp.maximum(adj_f, jnp.eye(N, dtype=jnp.float32))
    adj_i8 = adj_f.astype(jnp.int8)

    n_norm = jax.random.uniform(k3, (N, 1), dtype=jnp.float32,
                                minval=0.5, maxval=1.5)

    # The torch module zero-inits fc/attn weights (degenerate test), so use
    # small deterministic randoms with variance-preserving scales.
    W = (1.0 / (D_in ** 0.5)) * jax.random.normal(
        k4, (H, D_in, D_out), dtype=jnp.float32)
    a = (1.0 / (D_out ** 0.5)) * jax.random.normal(
        k5, (H, 2, D_out), dtype=jnp.float32)

    out = gat_layer(x, adj_i8, n_norm, W, a, alpha=0.2, graph_norm=True,
                    residue=True, tile_r=tile_r, tile_c=tile_c, tile_p=tile_p)
    out = jax.block_until_ready(out)

    ref = gat_layer_ref(x, adj_f, n_norm, W, a, alpha=0.2, graph_norm=True,
                        residue=True)

    assert out.shape == (N, H * D_out), f"{name}: bad shape {out.shape}"
    assert not bool(jnp.any(jnp.isnan(out))), f"{name}: NaN in kernel output"
    err = float(jnp.max(jnp.abs(out - ref)))
    assert jnp.allclose(out, ref, atol=2e-3, rtol=2e-3), \
        f"{name}: mismatch vs reference (max abs err {err})"


if __name__ == "__main__":
    # Case 1: tiny head width (D_out=8 < 128) -> selector-mask aggregation path.
    # Residual active because D_in == n_heads * D_out.  2x2 grid exercises both
    # the parallel row axis and the column-tile accumulation.
    _run_case("small_heads", N=256, D_in=32, D_out=8, H=4,
              tile_r=128, tile_c=128, tile_p=128, seed=0)
    # Case 2: lane-dense head width (D_out=128) -> static per-head slab path and
    # a lane-dense (multiple-of-128) output slab.
    _run_case("lane_dense", N=256, D_in=256, D_out=128, H=2,
              tile_r=128, tile_c=128, tile_p=128, seed=1)
    print("KERNEL_OK")
</pallas_src>

<mosaic_0001>
module attributes {stable_mosaic.version = 11 : i64} {
  func.func @_proj_kernel(%arg0: i32, %arg1: memref<128x32xf32, #tpu.memory_space<vmem>>, %arg2: memref<32x32xf32, #tpu.memory_space<vmem>>, %arg3: memref<32x8xf32, #tpu.memory_space<vmem>>, %arg4: memref<128x32xf32, #tpu.memory_space<vmem>>, %arg5: memref<128x8xf32, #tpu.memory_space<vmem>>) attributes {dimension_semantics = [#tpu.dimension_semantics<parallel>], iteration_bounds = array<i64: 2>, scalar_prefetch = 0 : i64, scratch_operands = 0 : i64, tpu.core_type = #tpu.core_type<tc>, window_params = [{transform_indices = @transform_0, window_bounds = array<i64: 128, 32>}, {pipeline_mode = #tpu.pipeline_mode<synchronous>, transform_indices = @transform_1, window_bounds = array<i64: 32, 32>}, {pipeline_mode = #tpu.pipeline_mode<synchronous>, transform_indices = @transform_2, window_bounds = array<i64: 32, 8>}, {transform_indices = @transform_3, window_bounds = array<i64: 128, 32>}, {transform_indices = @transform_4, window_bounds = array<i64: 128, 8>}]} {
    %c0 = arith.constant 0 : index
    %c0_0 = arith.constant 0 : index
    %0 = vector.load %arg1[%c0, %c0_0] : memref<128x32xf32, #tpu.memory_space<vmem>>, vector<128x32xf32>
    %c0_1 = arith.constant 0 : index
    %c0_2 = arith.constant 0 : index
    %1 = vector.load %arg2[%c0_1, %c0_2] : memref<32x32xf32, #tpu.memory_space<vmem>>, vector<32x32xf32>
    %cst = arith.constant dense<0.000000e+00> : vector<128x32xf32>
    %2 = tpu.matmul %0, %1, %cst {dimension_numbers = #tpu.dot_dimension_numbers<[1], [0], [0], [1], [0, 0, 1, 1], [], []>} : vector<128x32xf32>, vector<32x32xf32>, vector<128x32xf32> -> vector<128x32xf32>
    %c0_3 = arith.constant 0 : index
    %c0_4 = arith.constant 0 : index
    %3 = vector.load %arg3[%c0_3, %c0_4] : memref<32x8xf32, #tpu.memory_space<vmem>>, vector<32x8xf32>
    %cst_5 = arith.constant dense<0.000000e+00> : vector<128x8xf32>
    %4 = tpu.matmul %2, %3, %cst_5 {dimension_numbers = #tpu.dot_dimension_numbers<[1], [0], [0], [1], [0, 0, 1, 1], [], []>} : vector<128x32xf32>, vector<32x8xf32>, vector<128x8xf32> -> vector<128x8xf32>
    %c0_6 = arith.constant 0 : index
    %c0_7 = arith.constant 0 : index
    %5 = vector.load %arg4[%c0_6, %c0_7] : memref<128x32xf32, #tpu.memory_space<vmem>>, vector<128x32xf32>
    tpu.vector_store %arg4[%c0_6, %c0_7], %2 {strides = array<i32>} : memref<128x32xf32, #tpu.memory_space<vmem>>, vector<128x32xf32>,
    %c0_8 = arith.constant 0 : index
    %c0_9 = arith.constant 0 : index
    %6 = vector.load %arg5[%c0_8, %c0_9] : memref<128x8xf32, #tpu.memory_space<vmem>>, vector<128x8xf32>
    tpu.vector_store %arg5[%c0_8, %c0_9], %4 {strides = array<i32>} : memref<128x8xf32, #tpu.memory_space<vmem>>, vector<128x8xf32>,
    return
  }
  func.func @transform_0(%arg0: i32) -> (i32, i32) {
    %c0_i32 = arith.constant 0 : i32
    %c0_i32_0 = arith.constant 0 : i32
    return %arg0, %c0_i32 : i32, i32
  }
  func.func @transform_1(%arg0: i32) -> (i32, i32) {
    %c0_i32 = arith.constant 0 : i32
    %c0_i32_0 = arith.constant 0 : i32
    %c0_i32_1 = arith.constant 0 : i32
    return %c0_i32, %c0_i32_0 : i32, i32
  }
  func.func @transform_2(%arg0: i32) -> (i32, i32) {
    %c0_i32 = arith.constant 0 : i32
    %c0_i32_0 = arith.constant 0 : i32
    %c0_i32_1 = arith.constant 0 : i32
    return %c0_i32, %c0_i32_0 : i32, i32
  }
  func.func @transform_3(%arg0: i32) -> (i32, i32) {
    %c0_i32 = arith.constant 0 : i32
    %c0_i32_0 = arith.constant 0 : i32
    return %arg0, %c0_i32 : i32, i32
  }
  func.func @transform_4(%arg0: i32) -> (i32, i32) {
    %c0_i32 = arith.constant 0 : i32
    %c0_i32_0 = arith.constant 0 : i32
    return %arg0, %c0_i32 : i32, i32
  }
}

</mosaic_0001>

<bundles_post_ra>
// kernel: tpu_custom_call.1
= control target key start
LH: loop header
LB: loop body
LE: loop exit
PB: predicated region body
PF: predicated region fallthrough
CT: control target
= control target key end

     0   :  { %s939_s15 = smov 0   ;;  %s1106_s0 = inlined_call_operand.vmem [shape: f32[256,32], index: 0, kind: input, shape index: {}]   ;;  %s1107_s1 = inlined_call_operand.vmem [shape: f32[32,32], index: 1, kind: input, shape index: {}]   ;;  %s1108_s2 = inlined_call_operand.vmem [shape: f32[32,8], index: 2, kind: input, shape index: {}]   ;;  %s1109_s3 = inlined_call_operand.vmem [shape: f32[256,32], index: 3, kind: output, shape index: {0}]   ;;  %s1110_s4 = inlined_call_operand.vmem [shape: f32[256,8], index: 4, kind: output, shape index: {1}]  }
   0x1 LB: > { %s749_s16 = sadd.s32 4294967295, %s912_s15   ;;  %p753_p0 = scmp.ge.s32.totalorder %s912_s15, 1  ;;  %s912_s15 = sphi %s939_s15, %s15_s15  }
   0x2   : > { %p166_p1 = scmp.lt.s32.totalorder %s912_s15, 3 }
   0x4   : > { %p167_p2 = pnand %p753_p0, %p166_p1 }
   0x5   : > { %s754_s21 = sshll.u32 (!%p167_p2), %s749_s16, 4 }
   0x6   : > { %170 = sbr.rel (%p167_p2) target bundleno = 440 (0x1b8), region = 32  ;;  %p198_p3 = scmp.lt.s32.totalorder (!%p167_p2), %s754_s21, 31 }
   0xb   : > { %v234_v0 = vld [vmem:[%s1107_s1 + $0x18] sm:$0xff]  ;;  %v233_v1 = vld [vmem:[%s1107_s1 + $0x10] sm:$0xff]  ;;  %v232_v4 = vld [vmem:[%s1107_s1 + $0x8] sm:$0xff]  ;;  %s1112_s21 = smov (!%p198_p3, %s754_s21), 31  ;;  %vm235_vm0 = vcmask 261120   ;;  %vm642_vm1 = vcmask 64512  }
   0xc   : > { %834 = vmatprep.subr.mxu0 %v234_v0  ;;  %v432_v2 = vld [vmem:[%s1108_s2 + $0x18] sm:$0xff]  ;;  %v431_v3 = vld [vmem:[%s1108_s2 + $0x10] sm:$0xff]  ;;  %v231_v5 = vld [vmem:[%s1107_s1] sm:$0xff]  ;;  %s965_s30 = sshll.u32 %s1112_s21, 3 }
   0xd   : > { %835 = vmatpush3.msra.mxu0 %v234_v0  ;;  %866 = vmatprep.subr.mxu1 %v432_v2  ;;  %s971_s7 = scalar_lea.vmem %s1106_s0, %s965_s30  ;;  %v430_v22 = vld [vmem:[%s1108_s2 + $0x8] sm:$0xff]  ;;  %v429_v23 = vld [vmem:[%s1108_s2] sm:$0xff]  ;;  %s1015_s14 = scalar_lea.vmem %s1109_s3, %s965_s30 }
   0xe   : > { %836 = vmatprep.subr.mxu0 %v233_v1  ;;  %867 = vmatpush3.msra.mxu1 %v432_v2  ;;  %v215_v6 = vld [vmem:[%s971_s7] sm:$0xff]  ;;  %v216_v7 = vld [vmem:[%s971_s7 + $0x8] sm:$0xff]  ;;  %v217_v8 = vld [vmem:[%s971_s7 + $0x10] sm:$0xff]  ;;  %s1069_s18 = scalar_lea.vmem %s1110_s4, %s965_s30 }
   0xf   : > { %837 = vmatpush3.msra.mxu0 %v233_v1  ;;  %868 = vmatprep.subr.mxu1 %v431_v3  ;;  %v218_v9 = vld [vmem:[%s971_s7 + $0x18] sm:$0xff]  ;;  %v219_v10 = vld [vmem:[%s971_s7 + $0x20] sm:$0xff]  ;;  %v220_v11 = vld [vmem:[%s971_s7 + $0x28] sm:$0xff] }
  0x10   : > { %838 = vmatprep.subr.mxu0 %v232_v4  ;;  %869 = vmatpush3.msra.mxu1 %v431_v3  ;;  %v221_v12 = vld [vmem:[%s971_s7 + $0x30] sm:$0xff]  ;;  %v222_v13 = vld [vmem:[%s971_s7 + $0x38] sm:$0xff]  ;;  %v223_v14 = vld [vmem:[%s971_s7 + $0x40] sm:$0xff] }
  0x11   : > { %839 = vmatpush3.msra.mxu0 %v232_v4  ;;  %842 = vmatprep.mubr.msk.f32.mxu0 %vm235_vm0, %v215_v6  ;;  %v224_v15 = vld [vmem:[%s971_s7 + $0x48] sm:$0xff]  ;;  %v225_v16 = vld [vmem:[%s971_s7 + $0x50] sm:$0xff]  ;;  %v226_v17 = vld [vmem:[%s971_s7 + $0x58] sm:$0xff] }
  0x12   : > { %840 = vmatprep.subr.mxu0 %v231_v5  ;;  %v227_v18 = vld [vmem:[%s971_s7 + $0x60] sm:$0xff]  ;;  %v228_v19 = vld [vmem:[%s971_s7 + $0x68] sm:$0xff]  ;;  %v229_v20 = vld [vmem:[%s971_s7 + $0x70] sm:$0xff]  ;;  %870 = vmatprep.subr.mxu1 %v430_v22 }
  0x13   : > { %841 = vmatpush3.msra.mxu0 %v231_v5  ;;  %v230_v21 = vld [vmem:[%s971_s7 + $0x78] sm:$0xff]  ;;  %871 = vmatpush3.msra.mxu1 %v430_v22 }
  0x14   : > { %843 = vmatmul.mubr.msk.f32.vlgmr.msra.gmra.mxu0 %vm235_vm0, %v216_v7  ;;  %872 = vmatprep.subr.mxu1 %v429_v23 }
  0x15   : > { %845 = vmatprep.mubr.msk.f32.mxu0 %vm235_vm0, %v217_v8  ;;  %873 = vmatpush3.msra.mxu1 %v429_v23 }
  0x18   : > { %846 = vmatmul.mubr.msk.f32.gmra.mxu0 %vm235_vm0, %v218_v9 }
  0x19   : > { %848 = vmatprep.mubr.msk.f32.mxu0 %vm235_vm0, %v219_v10 }
  0x1c   : > { %849 = vmatmul.mubr.msk.f32.gmra.mxu0 %vm235_vm0, %v220_v11 }
  0x1d   : > { %851 = vmatprep.mubr.msk.f32.mxu0 %vm235_vm0, %v221_v12 }
  0x20   : > { %852 = vmatmul.mubr.msk.f32.gmra.mxu0 %vm235_vm0, %v222_v13 }
  0x21   : > { %854 = vmatprep.mubr.msk.f32.mxu0 %vm235_vm0, %v223_v14 }
  0x24   : > { %855 = vmatmul.mubr.msk.f32.gmra.mxu0 %vm235_vm0, %v224_v15 }
  0x25   : > { %857 = vmatprep.mubr.msk.f32.mxu0 %vm235_vm0, %v225_v16 }
  0x28   : > { %858 = vmatmul.mubr.msk.f32.gmra.mxu0 %vm235_vm0, %v226_v17 }
  0x29   : > { %860 = vmatprep.mubr.msk.f32.mxu0 %vm235_vm0, %v227_v18 }
  0x2c   : > { %861 = vmatmul.mubr.msk.f32.gmra.mxu0 %vm235_vm0, %v228_v19 }
  0x2d   : > { %863 = vmatprep.mubr.msk.f32.mxu0 %vm235_vm0, %v229_v20 }
  0x30   : > { %864 = vmatmul.mubr.msk.f32.gmra.mxu0 %vm235_vm0, %v230_v21 }
  0xd4   : > { %v844_v24 = vpop.f32.mrf.mxu0 }
  0xd5   : > { %627 = vst.msk [vmem:[%s1015_s14 + $0x8] sm:$0xff] %vm235_vm0, %v844_v24 }
  0xd6   : > { %v350_v25 = vpop.f32.mrf.mxu0 }
  0xd7   : > { %626 = vst.msk [vmem:[%s1015_s14] sm:$0xff] %vm235_vm0, %v350_v25  ;;  %874 = vmatprep.mubr.msk.f32.mxu1 %vm235_vm0, %v350_v25 }
  0xd8   : > { %v847_v26 = vpop.f32.mrf.mxu0  ;;  %875 = vmatmul.mubr.msk.f32.vlgmr.msra.gmra.mxu1 %vm235_vm0, %v844_v24 }
  0xd9   : > { %629 = vst.msk [vmem:[%s1015_s14 + $0x18] sm:$0xff] %vm235_vm0, %v847_v26 }
  0xda   : > { %v360_v27 = vpop.f32.mrf.mxu0 }
  0xdb   : > { %628 = vst.msk [vmem:[%s1015_s14 + $0x10] sm:$0xff] %vm235_vm0, %v360_v27  ;;  %877 = vmatprep.mubr.msk.f32.mxu1 %vm235_vm0, %v360_v27 }
  0xdc   : > { %v850_v28 = vpop.f32.mrf.mxu0  ;;  %878 = vmatmul.mubr.msk.f32.gmra.mxu1 %vm235_vm0, %v847_v26 }
  0xdd   : > { %631 = vst.msk [vmem:[%s1015_s14 + $0x28] sm:$0xff] %vm235_vm0, %v850_v28 }
  0xde   : > { %v370_v29 = vpop.f32.mrf.mxu0 }
  0xdf   : > { %630 = vst.msk [vmem:[%s1015_s14 + $0x20] sm:$0xff] %vm235_vm0, %v370_v29  ;;  %880 = vmatprep.mubr.msk.f32.mxu1 %vm235_vm0, %v370_v29 }
  0xe0   : > { %v853_v30 = vpop.f32.mrf.mxu0  ;;  %881 = vmatmul.mubr.msk.f32.gmra.mxu1 %vm235_vm0, %v850_v28 }
  0xe1   : > { %633 = vst.msk [vmem:[%s1015_s14 + $0x38] sm:$0xff] %vm235_vm0, %v853_v30 }
  0xe2   : > { %v380_v31 = vpop.f32.mrf.mxu0 }
  0xe3   : > { %632 = vst.msk [vmem:[%s1015_s14 + $0x30] sm:$0xff] %vm235_vm0, %v380_v31  ;;  %883 = vmatprep.mubr.msk.f32.mxu1 %vm235_vm0, %v380_v31 }
  0xe4   : > { %v856_v32 = vpop.f32.mrf.mxu0  ;;  %884 = vmatmul.mubr.msk.f32.gmra.mxu1 %vm235_vm0, %v853_v30 }
  0xe5   : > { %635 = vst.msk [vmem:[%s1015_s14 + $0x48] sm:$0xff] %vm235_vm0, %v856_v32 }
  0xe6   : > { %v390_v33 = vpop.f32.mrf.mxu0 }
  0xe7   : > { %634 = vst.msk [vmem:[%s1015_s14 + $0x40] sm:$0xff] %vm235_vm0, %v390_v33  ;;  %886 = vmatprep.mubr.msk.f32.mxu1 %vm235_vm0, %v390_v33 }
  0xe8   : > { %v859_v34 = vpop.f32.mrf.mxu0  ;;  %887 = vmatmul.mubr.msk.f32.gmra.mxu1 %vm235_vm0, %v856_v32 }
  0xe9   : > { %637 = vst.msk [vmem:[%s1015_s14 + $0x58] sm:$0xff] %vm235_vm0, %v859_v34 }
  0xea   : > { %v400_v35 = vpop.f32.mrf.mxu0 }
  0xeb   : > { %636 = vst.msk [vmem:[%s1015_s14 + $0x50] sm:$0xff] %vm235_vm0, %v400_v35  ;;  %889 = vmatprep.mubr.msk.f32.mxu1 %vm235_vm0, %v400_v35 }
  0xec   : > { %v862_v36 = vpop.f32.mrf.mxu0  ;;  %890 = vmatmul.mubr.msk.f32.gmra.mxu1 %vm235_vm0, %v859_v34 }
  0xed   : > { %639 = vst.msk [vmem:[%s1015_s14 + $0x68] sm:$0xff] %vm235_vm0, %v862_v36 }
  0xee   : > { %v410_v37 = vpop.f32.mrf.mxu0 }
  0xef   : > { %638 = vst.msk [vmem:[%s1015_s14 + $0x60] sm:$0xff] %vm235_vm0, %v410_v37  ;;  %892 = vmatprep.mubr.msk.f32.mxu1 %vm235_vm0, %v410_v37 }
  0xf0   : > { %v865_v38 = vpop.f32.mrf.mxu0  ;;  %893 = vmatmul.mubr.msk.f32.gmra.mxu1 %vm235_vm0, %v862_v36 }
  0xf1   : > { %641 = vst.msk [vmem:[%s1015_s14 + $0x78] sm:$0xff] %vm235_vm0, %v865_v38 }
  0xf2   : > { %v420_v39 = vpop.f32.mrf.mxu0 }
  0xf3   : > { %640 = vst.msk [vmem:[%s1015_s14 + $0x70] sm:$0xff] %vm235_vm0, %v420_v39  ;;  %895 = vmatprep.mubr.msk.f32.mxu1 %vm235_vm0, %v420_v39 }
  0xf4   : > { %896 = vmatmul.mubr.msk.f32.gmra.mxu1 %vm235_vm0, %v865_v38 }
 0x198   : > { %v876_v40 = vpop.f32.mrf.mxu1 }
 0x199   : > { %644 = vst.msk [vmem:[%s1069_s18 + $0x8] sm:$0xff] %vm642_vm1, %v876_v40 }
 0x19a   : > { %v547_v41 = vpop.f32.mrf.mxu1 }
 0x19b   : > { %643 = vst.msk [vmem:[%s1069_s18] sm:$0xff] %vm642_vm1, %v547_v41 }
 0x19c   : > { %v879_v42 = vpop.f32.mrf.mxu1 }
 0x19d   : > { %646 = vst.msk [vmem:[%s1069_s18 + $0x18] sm:$0xff] %vm642_vm1, %v879_v42 }
 0x19e   : > { %v557_v43 = vpop.f32.mrf.mxu1 }
 0x19f   : > { %645 = vst.msk [vmem:[%s1069_s18 + $0x10] sm:$0xff] %vm642_vm1, %v557_v43 }
 0x1a0   : > { %v882_v44 = vpop.f32.mrf.mxu1 }
 0x1a1   : > { %648 = vst.msk [vmem:[%s1069_s18 + $0x28] sm:$0xff] %vm642_vm1, %v882_v44 }
 0x1a2   : > { %v567_v45 = vpop.f32.mrf.mxu1 }
 0x1a3   : > { %647 = vst.msk [vmem:[%s1069_s18 + $0x20] sm:$0xff] %vm642_vm1, %v567_v45 }
 0x1a4   : > { %v885_v46 = vpop.f32.mrf.mxu1 }
 0x1a5   : > { %650 = vst.msk [vmem:[%s1069_s18 + $0x38] sm:$0xff] %vm642_vm1, %v885_v46 }
 0x1a6   : > { %v577_v47 = vpop.f32.mrf.mxu1 }
 0x1a7   : > { %649 = vst.msk [vmem:[%s1069_s18 + $0x30] sm:$0xff] %vm642_vm1, %v577_v47 }
 0x1a8   : > { %v888_v48 = vpop.f32.mrf.mxu1 }
 0x1a9   : > { %652 = vst.msk [vmem:[%s1069_s18 + $0x48] sm:$0xff] %vm642_vm1, %v888_v48 }
 0x1aa   : > { %v587_v49 = vpop.f32.mrf.mxu1 }
 0x1ab   : > { %651 = vst.msk [vmem:[%s1069_s18 + $0x40] sm:$0xff] %vm642_vm1, %v587_v49 }
 0x1ac   : > { %v891_v50 = vpop.f32.mrf.mxu1 }
 0x1ad   : > { %654 = vst.msk [vmem:[%s1069_s18 + $0x58] sm:$0xff] %vm642_vm1, %v891_v50 }
 0x1ae   : > { %v597_v51 = vpop.f32.mrf.mxu1 }
 0x1af   : > { %653 = vst.msk [vmem:[%s1069_s18 + $0x50] sm:$0xff] %vm642_vm1, %v597_v51 }
 0x1b0   : > { %v894_v52 = vpop.f32.mrf.mxu1 }
 0x1b1   : > { %656 = vst.msk [vmem:[%s1069_s18 + $0x68] sm:$0xff] %vm642_vm1, %v894_v52 }
 0x1b2   : > { %v607_v53 = vpop.f32.mrf.mxu1 }
 0x1b3   : > { %655 = vst.msk [vmem:[%s1069_s18 + $0x60] sm:$0xff] %vm642_vm1, %v607_v53 }
 0x1b4   : > { %v897_v54 = vpop.f32.mrf.mxu1 }
 0x1b5   : > { %658 = vst.msk [vmem:[%s1069_s18 + $0x78] sm:$0xff] %vm642_vm1, %v897_v54 }
 0x1b6   : > { %v617_v55 = vpop.f32.mrf.mxu1 }
 0x1b7   : > { %657 = vst.msk [vmem:[%s1069_s18 + $0x70] sm:$0xff] %vm642_vm1, %v617_v55 }
 0x1b8 PF: > { %s15_s15 = sadd.s32 1, %s912_s15  }
 0x1b9   : > { %p12_p4 = scmp.ge.s32.totalorder %s15_s15, 4  }
 0x1bb   :  { %14 = sbr.rel (!%p12_p4) target bundleno = 1 (0x1), region = 74 }

</bundles_post_ra>
